<compile_context>
chip_gen: v6e
topology: v6e:2x2x1
jax: 0.10.0
libtpu: 0.0.40
codegen_flags: <defaults>
</compile_context>

<pallas_src>
import math

import jax
import jax.numpy as jnp
from jax.experimental import pallas as pl
from jax.experimental.pallas import tpu as pltpu

D_MODEL = 32
N_HEADS = 4


def mha_kernel(q_ref, k_ref, v_ref, mask_ref,
               wqkv_ref, bqkv_ref, wo_ref, bo_ref, o_ref):
    # q_ref/k_ref/v_ref: (B, S, D); mask_ref: (B, 1, S)
    # wqkv_ref: (3, H, d_k, D)  per-head weights stored transposed; Wq pre-scaled
    # bqkv_ref: (3, H, 1, d_k)  bq pre-scaled
    # wo_ref:   (H, d_k, D);    bo_ref: (1, D)
    B, S, D = q_ref.shape
    H = wo_ref.shape[0]
    d_k = D // H
    BH = B * H

    def project(x_ref, idx):
        # (B, S, D) -> (B*H, S, d_k) head-major, with B folded into the batch
        # dim of one batched dot_general.  Only leading dims are broadcast /
        # merged (no lane/sublane relayout).  Contraction is over the last dim
        # of both operands (transposed weight storage -> 4x less lane padding).
        xb = jnp.broadcast_to(x_ref[...][:, None, :, :], (B, H, S, D)).reshape(BH, S, D)
        w = jnp.broadcast_to(wqkv_ref[idx][None], (B, H, d_k, D)).reshape(BH, d_k, D)
        b = jnp.broadcast_to(bqkv_ref[idx][None], (B, H, 1, d_k)).reshape(BH, 1, d_k)
        return jax.lax.dot_general(
            xb, w, (((2,), (2,)), ((0,), (0,))),
            preferred_element_type=jnp.float32) + b

    qh = project(q_ref, 0)                      # (BH, S, d_k), scale pre-folded
    kh = project(k_ref, 1)                      # (BH, S, d_k)
    vh = project(v_ref, 2)                      # (BH, S, d_k)

    # scores: one batched q k^T over all (batch, head) pairs.
    scores = jax.lax.dot_general(
        qh, kh, (((2,), (2,)), ((0,), (0,))),
        preferred_element_type=jnp.float32)     # (BH, S, S)

    # masked_fill(mask == 0, -1e9), broadcast over heads and query positions.
    maskf = jnp.broadcast_to(mask_ref[...][:, None, :, :], (B, H, 1, S)).reshape(BH, 1, S)
    scores = jnp.where(maskf >= 0.5, scores, jnp.float32(-1e9))

    # Softmax over keys (lane axis).  Exact reciprocal to stay safely inside
    # the 1e-4 tolerance vs the f32 reference.
    m = jnp.max(scores, axis=-1, keepdims=True)
    p = jnp.exp(scores - m)
    denom = jnp.sum(p, axis=-1, keepdims=True)
    p = p * pl.reciprocal(denom, approx=False)

    # context: batched p @ v over all (batch, head) pairs.
    ctx = jax.lax.dot_general(
        p, vh, (((2,), (1,)), ((0,), (0,))),
        preferred_element_type=jnp.float32)     # (BH, S, d_k)

    # Output projection: concat_h(ctx_h) @ Wo == sum_h ctx_h @ Wo_h (no concat,
    # no transpose).  The whole (B*S, D) slab is written by this one invocation.
    wo_b = jnp.broadcast_to(wo_ref[...][None], (B, H, d_k, D)).reshape(BH, d_k, D)
    per_bh = jax.lax.dot_general(
        ctx, wo_b, (((2,), (1,)), ((0,), (0,))),
        preferred_element_type=jnp.float32)     # (BH, S, D)
    o_ref[...] = jnp.sum(per_bh.reshape(B, H, S, D), axis=1) + bo_ref[...]
    # TODO(synk): nn.Dropout(p=0.1) on the attention weights is identity at
    # inference; not implemented.
    # TODO(synk): for large S the monolithic (BH,S,S) scores buffer should be
    # replaced by a KV-blocked grid with online softmax (v7x has only 64 MiB VMEM).


def prepare_params(params):
    """One-time, init-time repack of the 4 nn.Linear parameter sets.

    Hoisted out of the per-call path.  The attention scale 1/sqrt(d_k) is
    folded into Wq and bq here.  Per-head Q/K/V weights are stored transposed
    as (H, d_k, D) so each slab pads 4x (not 16x) in lanes and the projection
    contracts over the last dim of both operands.
    """
    D = params["wq"].shape[0]
    H = N_HEADS
    d_k = D // H
    scale = 1.0 / math.sqrt(d_k)

    def head_major_t(w):   # (D, D) -> (H, d_k, D); head h uses w[:, h*d_k:(h+1)*d_k]
        return jnp.transpose(w.reshape(D, H, d_k), (1, 2, 0))

    wqkv = jnp.stack([head_major_t(params["wq"]) * scale,
                      head_major_t(params["wk"]),
                      head_major_t(params["wv"])])               # (3, H, d_k, D)
    bqkv = jnp.stack([params["bq"].reshape(H, 1, d_k) * scale,
                      params["bk"].reshape(H, 1, d_k),
                      params["bv"].reshape(H, 1, d_k)])          # (3, H, 1, d_k)
    return {
        "wqkv": wqkv,
        "bqkv": bqkv,
        "wo": params["wo"].reshape(H, d_k, D),                   # (H, d_k, D)
        "bo": params["bo"],                                      # (1, D)
    }


@jax.jit
def multi_head_attention(query, key, value, mask, packed):
    """Fused MHA forward.  `packed` comes from prepare_params() (init-time)."""
    B, S, D = query.shape
    # Single invocation (no grid): all arrays are whole-array VMEM blocks, so
    # there is no per-batch pipeline overhead and parameters are staged once.
    vmem = pl.BlockSpec(memory_space=pltpu.MemorySpace.VMEM)
    return pl.pallas_call(
        mha_kernel,
        out_shape=jax.ShapeDtypeStruct((B, S, D), jnp.float32),
        in_specs=[vmem] * 8,
        out_specs=vmem,
    )(query, key, value, mask,
      packed["wqkv"], packed["bqkv"], packed["wo"], packed["bo"])


# ---------------- pure-JAX reference (mirrors the torch module) ----------------
def reference(query, key, value, mask, params):
    B, S, D = query.shape
    H, d_k = N_HEADS, D // N_HEADS

    q = query @ params["wq"] + params["bq"]
    k = key @ params["wk"] + params["bk"]
    v = value @ params["wv"] + params["bv"]

    def split(t):  # (B, S, D) -> (B, H, S, d_k)
        return t.reshape(B, S, H, d_k).transpose(0, 2, 1, 3)

    qh, kh, vh = split(q), split(k), split(v)
    scores = jnp.einsum("bhqd,bhkd->bhqk", qh, kh) / jnp.sqrt(jnp.float32(d_k))
    m = mask[:, None, :, :]                      # (B, 1, 1, S), like mask.unsqueeze(1)
    scores = jnp.where(m == 0.0, -1e9, scores)
    p = jax.nn.softmax(scores, axis=-1)
    ctx = jnp.einsum("bhqk,bhkd->bhqd", p, vh)
    ctx = ctx.transpose(0, 2, 1, 3).reshape(B, S, D)
    return ctx @ params["wo"] + params["bo"]


def make_params(key):
    ks = jax.random.split(key, 8)
    std = 0.05
    return {
        "wq": std * jax.random.normal(ks[0], (D_MODEL, D_MODEL), jnp.float32),
        "bq": std * jax.random.normal(ks[1], (1, D_MODEL), jnp.float32),
        "wk": std * jax.random.normal(ks[2], (D_MODEL, D_MODEL), jnp.float32),
        "bk": std * jax.random.normal(ks[3], (1, D_MODEL), jnp.float32),
        "wv": std * jax.random.normal(ks[4], (D_MODEL, D_MODEL), jnp.float32),
        "bv": std * jax.random.normal(ks[5], (1, D_MODEL), jnp.float32),
        "wo": std * jax.random.normal(ks[6], (D_MODEL, D_MODEL), jnp.float32),
        "bo": std * jax.random.normal(ks[7], (1, D_MODEL), jnp.float32),
    }


if __name__ == "__main__":
    B, S = 2, 8
    key = jax.random.PRNGKey(0)
    kx, km, kp = jax.random.split(key, 3)

    x = jax.random.normal(kx, (B, S, D_MODEL), jnp.float32)
    # mask: 1 = attend, 0 = masked; guarantee at least one attendable key per batch.
    mask = (jax.random.uniform(km, (B, 1, S)) > 0.2).astype(jnp.float32)
    mask = mask.at[:, :, 0].set(1.0)
    params = make_params(kp)
    packed = prepare_params(params)          # once, at init time (hoisted repack)

    out = multi_head_attention(x, x, x, mask, packed)     # self-attention
    out = jax.block_until_ready(out)

    ref = reference(x, x, x, mask, params)
    assert out.shape == (B, S, D_MODEL)
    assert jnp.allclose(out, ref, atol=1e-4, rtol=1e-4), "mismatch vs JAX reference"

    print("KERNEL_OK")
</pallas_src>

<mosaic_0001>
module attributes {stable_mosaic.version = 11 : i64} {
  func.func @mha_kernel(%arg0: memref<2x8x32xf32, #tpu.memory_space<vmem>>, %arg1: memref<2x8x32xf32, #tpu.memory_space<vmem>>, %arg2: memref<2x8x32xf32, #tpu.memory_space<vmem>>, %arg3: memref<2x1x8xf32, #tpu.memory_space<vmem>>, %arg4: memref<3x4x8x32xf32, #tpu.memory_space<vmem>>, %arg5: memref<3x4x1x8xf32, #tpu.memory_space<vmem>>, %arg6: memref<4x8x32xf32, #tpu.memory_space<vmem>>, %arg7: memref<1x32xf32, #tpu.memory_space<vmem>>, %arg8: memref<2x8x32xf32, #tpu.memory_space<vmem>>) attributes {dimension_semantics = [], scalar_prefetch = 0 : i64, scratch_operands = 0 : i64, tpu.core_type = #tpu.core_type<tc>} {
    %c0 = arith.constant 0 : index
    %c0_0 = arith.constant 0 : index
    %c0_1 = arith.constant 0 : index
    %0 = vector.load %arg0[%c0, %c0_0, %c0_1] : memref<2x8x32xf32, #tpu.memory_space<vmem>>, vector<2x8x32xf32>
    %1 = vector.shape_cast %0 : vector<2x8x32xf32> to vector<2x1x8x32xf32>
    %2 = vector.shape_cast %1 : vector<2x1x8x32xf32> to vector<2x1x8x32xf32>
    %3 = vector.broadcast %2 : vector<2x1x8x32xf32> to vector<2x4x8x32xf32>
    %4 = vector.shape_cast %3 : vector<2x4x8x32xf32> to vector<8x8x32xf32>
    %c0_2 = arith.constant 0 : index
    %c0_3 = arith.constant 0 : index
    %c0_4 = arith.constant 0 : index
    %c0_5 = arith.constant 0 : index
    %5 = vector.load %arg4[%c0_2, %c0_3, %c0_4, %c0_5] : memref<3x4x8x32xf32, #tpu.memory_space<vmem>>, vector<1x4x8x32xf32>
    %6 = vector.shape_cast %5 : vector<1x4x8x32xf32> to vector<4x8x32xf32>
    %7 = vector.shape_cast %6 : vector<4x8x32xf32> to vector<1x4x8x32xf32>
    %8 = vector.shape_cast %7 : vector<1x4x8x32xf32> to vector<1x4x8x32xf32>
    %9 = vector.broadcast %8 : vector<1x4x8x32xf32> to vector<2x4x8x32xf32>
    %10 = vector.shape_cast %9 : vector<2x4x8x32xf32> to vector<8x8x32xf32>
    %c0_6 = arith.constant 0 : index
    %c0_7 = arith.constant 0 : index
    %c0_8 = arith.constant 0 : index
    %c0_9 = arith.constant 0 : index
    %11 = vector.load %arg5[%c0_6, %c0_7, %c0_8, %c0_9] : memref<3x4x1x8xf32, #tpu.memory_space<vmem>>, vector<1x4x1x8xf32>
    %12 = vector.shape_cast %11 : vector<1x4x1x8xf32> to vector<4x1x8xf32>
    %13 = vector.shape_cast %12 : vector<4x1x8xf32> to vector<1x4x1x8xf32>
    %14 = vector.shape_cast %13 : vector<1x4x1x8xf32> to vector<1x4x1x8xf32>
    %15 = vector.broadcast %14 : vector<1x4x1x8xf32> to vector<2x4x1x8xf32>
    %16 = vector.shape_cast %15 : vector<2x4x1x8xf32> to vector<8x1x8xf32>
    %cst = arith.constant dense<0.000000e+00> : vector<8x8x8xf32>
    %17 = tpu.matmul %4, %10, %cst {dimension_numbers = #tpu.dot_dimension_numbers<[2], [2], [1], [1], [0, 0, 0, 1, 1, 1], [0], [0]>} : vector<8x8x32xf32>, vector<8x8x32xf32>, vector<8x8x8xf32> -> vector<8x8x8xf32>
    %18 = vector.broadcast %16 : vector<8x1x8xf32> to vector<8x8x8xf32>
    %19 = arith.addf %17, %18 : vector<8x8x8xf32>
    %c0_10 = arith.constant 0 : index
    %c0_11 = arith.constant 0 : index
    %c0_12 = arith.constant 0 : index
    %20 = vector.load %arg1[%c0_10, %c0_11, %c0_12] : memref<2x8x32xf32, #tpu.memory_space<vmem>>, vector<2x8x32xf32>
    %21 = vector.shape_cast %20 : vector<2x8x32xf32> to vector<2x1x8x32xf32>
    %22 = vector.shape_cast %21 : vector<2x1x8x32xf32> to vector<2x1x8x32xf32>
    %23 = vector.broadcast %22 : vector<2x1x8x32xf32> to vector<2x4x8x32xf32>
    %24 = vector.shape_cast %23 : vector<2x4x8x32xf32> to vector<8x8x32xf32>
    %c1 = arith.constant 1 : index
    %c0_13 = arith.constant 0 : index
    %c0_14 = arith.constant 0 : index
    %c0_15 = arith.constant 0 : index
    %25 = vector.load %arg4[%c1, %c0_13, %c0_14, %c0_15] : memref<3x4x8x32xf32, #tpu.memory_space<vmem>>, vector<1x4x8x32xf32>
    %26 = vector.shape_cast %25 : vector<1x4x8x32xf32> to vector<4x8x32xf32>
    %27 = vector.shape_cast %26 : vector<4x8x32xf32> to vector<1x4x8x32xf32>
    %28 = vector.shape_cast %27 : vector<1x4x8x32xf32> to vector<1x4x8x32xf32>
    %29 = vector.broadcast %28 : vector<1x4x8x32xf32> to vector<2x4x8x32xf32>
    %30 = vector.shape_cast %29 : vector<2x4x8x32xf32> to vector<8x8x32xf32>
    %c1_16 = arith.constant 1 : index
    %c0_17 = arith.constant 0 : index
    %c0_18 = arith.constant 0 : index
    %c0_19 = arith.constant 0 : index
    %31 = vector.load %arg5[%c1_16, %c0_17, %c0_18, %c0_19] : memref<3x4x1x8xf32, #tpu.memory_space<vmem>>, vector<1x4x1x8xf32>
    %32 = vector.shape_cast %31 : vector<1x4x1x8xf32> to vector<4x1x8xf32>
    %33 = vector.shape_cast %32 : vector<4x1x8xf32> to vector<1x4x1x8xf32>
    %34 = vector.shape_cast %33 : vector<1x4x1x8xf32> to vector<1x4x1x8xf32>
    %35 = vector.broadcast %34 : vector<1x4x1x8xf32> to vector<2x4x1x8xf32>
    %36 = vector.shape_cast %35 : vector<2x4x1x8xf32> to vector<8x1x8xf32>
    %cst_20 = arith.constant dense<0.000000e+00> : vector<8x8x8xf32>
    %37 = tpu.matmul %24, %30, %cst_20 {dimension_numbers = #tpu.dot_dimension_numbers<[2], [2], [1], [1], [0, 0, 0, 1, 1, 1], [0], [0]>} : vector<8x8x32xf32>, vector<8x8x32xf32>, vector<8x8x8xf32> -> vector<8x8x8xf32>
    %38 = vector.broadcast %36 : vector<8x1x8xf32> to vector<8x8x8xf32>
    %39 = arith.addf %37, %38 : vector<8x8x8xf32>
    %c0_21 = arith.constant 0 : index
    %c0_22 = arith.constant 0 : index
    %c0_23 = arith.constant 0 : index
    %40 = vector.load %arg2[%c0_21, %c0_22, %c0_23] : memref<2x8x32xf32, #tpu.memory_space<vmem>>, vector<2x8x32xf32>
    %41 = vector.shape_cast %40 : vector<2x8x32xf32> to vector<2x1x8x32xf32>
    %42 = vector.shape_cast %41 : vector<2x1x8x32xf32> to vector<2x1x8x32xf32>
    %43 = vector.broadcast %42 : vector<2x1x8x32xf32> to vector<2x4x8x32xf32>
    %44 = vector.shape_cast %43 : vector<2x4x8x32xf32> to vector<8x8x32xf32>
    %c2 = arith.constant 2 : index
    %c0_24 = arith.constant 0 : index
    %c0_25 = arith.constant 0 : index
    %c0_26 = arith.constant 0 : index
    %45 = vector.load %arg4[%c2, %c0_24, %c0_25, %c0_26] : memref<3x4x8x32xf32, #tpu.memory_space<vmem>>, vector<1x4x8x32xf32>
    %46 = vector.shape_cast %45 : vector<1x4x8x32xf32> to vector<4x8x32xf32>
    %47 = vector.shape_cast %46 : vector<4x8x32xf32> to vector<1x4x8x32xf32>
    %48 = vector.shape_cast %47 : vector<1x4x8x32xf32> to vector<1x4x8x32xf32>
    %49 = vector.broadcast %48 : vector<1x4x8x32xf32> to vector<2x4x8x32xf32>
    %50 = vector.shape_cast %49 : vector<2x4x8x32xf32> to vector<8x8x32xf32>
    %c2_27 = arith.constant 2 : index
    %c0_28 = arith.constant 0 : index
    %c0_29 = arith.constant 0 : index
    %c0_30 = arith.constant 0 : index
    %51 = vector.load %arg5[%c2_27, %c0_28, %c0_29, %c0_30] : memref<3x4x1x8xf32, #tpu.memory_space<vmem>>, vector<1x4x1x8xf32>
    %52 = vector.shape_cast %51 : vector<1x4x1x8xf32> to vector<4x1x8xf32>
    %53 = vector.shape_cast %52 : vector<4x1x8xf32> to vector<1x4x1x8xf32>
    %54 = vector.shape_cast %53 : vector<1x4x1x8xf32> to vector<1x4x1x8xf32>
    %55 = vector.broadcast %54 : vector<1x4x1x8xf32> to vector<2x4x1x8xf32>
    %56 = vector.shape_cast %55 : vector<2x4x1x8xf32> to vector<8x1x8xf32>
    %cst_31 = arith.constant dense<0.000000e+00> : vector<8x8x8xf32>
    %57 = tpu.matmul %44, %50, %cst_31 {dimension_numbers = #tpu.dot_dimension_numbers<[2], [2], [1], [1], [0, 0, 0, 1, 1, 1], [0], [0]>} : vector<8x8x32xf32>, vector<8x8x32xf32>, vector<8x8x8xf32> -> vector<8x8x8xf32>
    %58 = vector.broadcast %56 : vector<8x1x8xf32> to vector<8x8x8xf32>
    %59 = arith.addf %57, %58 : vector<8x8x8xf32>
    %cst_32 = arith.constant dense<0.000000e+00> : vector<8x8x8xf32>
    %60 = tpu.matmul %19, %39, %cst_32 {dimension_numbers = #tpu.dot_dimension_numbers<[2], [2], [1], [1], [0, 0, 0, 1, 1, 1], [0], [0]>} : vector<8x8x8xf32>, vector<8x8x8xf32>, vector<8x8x8xf32> -> vector<8x8x8xf32>
    %c0_33 = arith.constant 0 : index
    %c0_34 = arith.constant 0 : index
    %c0_35 = arith.constant 0 : index
    %61 = vector.load %arg3[%c0_33, %c0_34, %c0_35] : memref<2x1x8xf32, #tpu.memory_space<vmem>>, vector<2x1x8xf32>
    %62 = vector.shape_cast %61 : vector<2x1x8xf32> to vector<2x1x1x8xf32>
    %63 = vector.shape_cast %62 : vector<2x1x1x8xf32> to vector<2x1x1x8xf32>
    %64 = vector.broadcast %63 : vector<2x1x1x8xf32> to vector<2x4x1x8xf32>
    %65 = vector.shape_cast %64 : vector<2x4x1x8xf32> to vector<8x1x8xf32>
    %cst_36 = arith.constant 5.000000e-01 : f32
    %66 = vector.broadcast %cst_36 : f32 to vector<8x1x8xf32>
    %67 = arith.cmpf oge, %65, %66 : vector<8x1x8xf32>
    %cst_37 = arith.constant -1.000000e+09 : f32
    %68 = vector.shape_cast %67 : vector<8x1x8xi1> to vector<8x1x8xi1>
    %69 = vector.broadcast %68 : vector<8x1x8xi1> to vector<8x8x8xi1>
    %70 = vector.broadcast %cst_37 : f32 to vector<8x8x8xf32>
    %71 = arith.select %69, %60, %70 : vector<8x8x8xi1>, vector<8x8x8xf32>
    %cst_38 = arith.constant dense<0xFF800000> : vector<8x8xf32>
    %72 = vector.multi_reduction <maximumf>, %71, %cst_38 [2] : vector<8x8x8xf32> to vector<8x8xf32>
    %73 = vector.shape_cast %72 : vector<8x8xf32> to vector<8x8x1xf32>
    %74 = vector.broadcast %73 : vector<8x8x1xf32> to vector<8x8x8xf32>
    %75 = arith.subf %71, %74 : vector<8x8x8xf32>
    %76 = math.exp %75 : vector<8x8x8xf32>
    %cst_39 = arith.constant dense<0.000000e+00> : vector<8x8xf32>
    %77 = vector.multi_reduction <add>, %76, %cst_39 [2] : vector<8x8x8xf32> to vector<8x8xf32>
    %78 = vector.shape_cast %77 : vector<8x8xf32> to vector<8x8x1xf32>
    %79 = tpu.reciprocal %78 : vector<8x8x1xf32> -> vector<8x8x1xf32>
    %80 = vector.broadcast %79 : vector<8x8x1xf32> to vector<8x8x8xf32>
    %81 = arith.mulf %76, %80 : vector<8x8x8xf32>
    %cst_40 = arith.constant dense<0.000000e+00> : vector<8x8x8xf32>
    %82 = tpu.matmul %81, %59, %cst_40 {dimension_numbers = #tpu.dot_dimension_numbers<[2], [1], [1], [2], [0, 0, 0, 1, 1, 2], [0], [0]>} : vector<8x8x8xf32>, vector<8x8x8xf32>, vector<8x8x8xf32> -> vector<8x8x8xf32>
    %c0_41 = arith.constant 0 : index
    %c0_42 = arith.constant 0 : index
    %c0_43 = arith.constant 0 : index
    %83 = vector.load %arg6[%c0_41, %c0_42, %c0_43] : memref<4x8x32xf32, #tpu.memory_space<vmem>>, vector<4x8x32xf32>
    %84 = vector.shape_cast %83 : vector<4x8x32xf32> to vector<1x4x8x32xf32>
    %85 = vector.shape_cast %84 : vector<1x4x8x32xf32> to vector<1x4x8x32xf32>
    %86 = vector.broadcast %85 : vector<1x4x8x32xf32> to vector<2x4x8x32xf32>
    %87 = vector.shape_cast %86 : vector<2x4x8x32xf32> to vector<8x8x32xf32>
    %cst_44 = arith.constant dense<0.000000e+00> : vector<8x8x32xf32>
    %88 = tpu.matmul %82, %87, %cst_44 {dimension_numbers = #tpu.dot_dimension_numbers<[2], [1], [1], [2], [0, 0, 0, 1, 1, 2], [0], [0]>} : vector<8x8x8xf32>, vector<8x8x32xf32>, vector<8x8x32xf32> -> vector<8x8x32xf32>
    %89 = vector.shape_cast %88 : vector<8x8x32xf32> to vector<2x4x8x32xf32>
    %cst_45 = arith.constant dense<0.000000e+00> : vector<2x8x32xf32>
    %90 = vector.multi_reduction <add>, %89, %cst_45 [1] : vector<2x4x8x32xf32> to vector<2x8x32xf32>
    %c0_46 = arith.constant 0 : index
    %c0_47 = arith.constant 0 : index
    %91 = vector.load %arg7[%c0_46, %c0_47] : memref<1x32xf32, #tpu.memory_space<vmem>>, vector<1x32xf32>
    %92 = vector.shape_cast %91 : vector<1x32xf32> to vector<1x1x32xf32>
    %93 = vector.broadcast %92 : vector<1x1x32xf32> to vector<2x8x32xf32>
    %94 = arith.addf %90, %93 : vector<2x8x32xf32>
    %c0_48 = arith.constant 0 : index
    %c0_49 = arith.constant 0 : index
    %c0_50 = arith.constant 0 : index
    %95 = vector.load %arg8[%c0_48, %c0_49, %c0_50] : memref<2x8x32xf32, #tpu.memory_space<vmem>>, vector<2x8x32xf32>
    tpu.vector_store %arg8[%c0_48, %c0_49, %c0_50], %94 {strides = array<i32>} : memref<2x8x32xf32, #tpu.memory_space<vmem>>, vector<2x8x32xf32>,
    return
  }
}

</mosaic_0001>

<bundles_post_ra>
// kernel: multi_head_attention.1
= control target key start
LH: loop header
LB: loop body
LE: loop exit
PB: predicated region body
PF: predicated region fallthrough
CT: control target
= control target key end

     0   :  { %13 = vsyncpa [#allocation3], 0  ;;  %s4909_s0 = inlined_call_operand.hbm [shape: f32[2,8,32], index: 0, kind: input, shape index: {}]   ;;  %s4910_s1 = inlined_call_operand.hbm [shape: f32[2,8,32], index: 1, kind: input, shape index: {}]   ;;  %s4911_s2 = inlined_call_operand.hbm [shape: f32[2,8,32], index: 2, kind: input, shape index: {}]   ;;  %s4912_s3 = inlined_call_operand.vmem [shape: f32[2,1,8], index: 3, kind: input, shape index: {}]   ;;  %s4913_s4 = inlined_call_operand.hbm [shape: f32[3,4,8,32], index: 4, kind: input, shape index: {}]   ;;  %s4914_s5 = inlined_call_operand.hbm [shape: f32[3,4,1,8], index: 5, kind: input, shape index: {}]   ;;  %s4915_s6 = inlined_call_operand.hbm [shape: f32[4,8,32], index: 6, kind: input, shape index: {}]   ;;  %s4916_s7 = inlined_call_operand.vmem [shape: f32[1,32], index: 7, kind: input, shape index: {}]   ;;  %s4917_s8 = inlined_call_operand.hbm [shape: f32[2,8,32], index: 8, kind: output, shape index: {}]  }
   0x1   :  { %14 = vsyncpa [#allocation6], 0 }
   0x2   :  { %15 = vsyncpa [#allocation9], 0 }
   0x3   :  { %16 = vsyncpa [#allocation12], 0 }
   0x4   :  { %17 = vsyncpa [#allocation4], 0  ;;  %s4516_s27 = smov [#allocation5]   ;;  %s4517_s29 = smov [#allocation8]  }
   0x5   :  { %s35_s28 = sshll.u32 %s4516_s27, 4  ;;  %s61_s30 = sshll.u32 %s4517_s29, 4  ;;  %s36_s28 = int_to_ptr.vmem [resolvable:$true] %s35_s28  ;;  %s62_s30 = int_to_ptr.vmem [resolvable:$true] %s61_s30 }
   0x6   :  { %s4374_s9 = scalar_lea.vmem %s36_s28, 256  ;;  %p4379_p1 = scmp.lt.s32.totalorder %s36_s28, %s36_s28 }
   0x7   :  { %p4375_p0 = scmp.ne.s32.totalorder %s36_s28, %s4374_s9  ;;  %p4380_p2 = scmp.lt.s32.totalorder %s4374_s9, %s4374_s9 }
   0x9   :  { %p4381_p3 = por %p4380_p2, %p4379_p1 }
   0xb   :  { %p4382_p4 = pnand %p4381_p3, %p4375_p0 }
   0xd   :  { %4385 = shalt.err (!%p4382_p4)
}
   0xe   :  { %s4518_s10 = smov 128   ;;  %s4519_s11 = smov 8  }
   0xf   :  { %41 = dma.hbm_to_vmem [thread:$0]  %s4910_s1, 256, %s36_s28, [#allocation6], %s4518_s10, %s4518_s10, %s4519_s11  }
  0x10   :  { %s4394_s14 = scalar_lea.vmem %s62_s30, 1536  ;;  %p4399_p6 = scmp.lt.s32.totalorder %s62_s30, %s62_s30 }
  0x11   :  { %p4395_p5 = scmp.ne.s32.totalorder %s62_s30, %s4394_s14  ;;  %p4400_p7 = scmp.lt.s32.totalorder %s4394_s14, %s4394_s14 }
  0x13   :  { %p4401_p8 = por %p4400_p7, %p4399_p6 }
  0x15   :  { %p4402_p9 = pnand %p4401_p8, %p4395_p5 }
  0x17   :  { %4405 = shalt.err (!%p4402_p9)
}
  0x18   :  { %67 = dma.hbm_to_vmem [thread:$0]  %s4913_s4, 1536, %s62_s30, [#allocation9], %s4518_s10, %s4518_s10, %s4519_s11  }
  0x19   :  { %s4520_s17 = smov [#allocation2]   ;;  %s4521_s19 = smov [#allocation7]  }
  0x1a   :  { %s23_s18 = sshll.u32 %s4520_s17, 4  ;;  %s47_s20 = sshll.u32 %s4521_s19, 4  ;;  %s24_s18 = int_to_ptr.vmem [resolvable:$true] %s23_s18  ;;  %s48_s20 = int_to_ptr.vmem [resolvable:$true] %s47_s20 }
  0x1b   :  { %s4414_s1 = scalar_lea.vmem %s24_s18, 256  ;;  %p4419_p11 = scmp.lt.s32.totalorder %s24_s18, %s24_s18 }
  0x1c   :  { %p4415_p10 = scmp.ne.s32.totalorder %s24_s18, %s4414_s1  ;;  %p4420_p12 = scmp.lt.s32.totalorder %s4414_s1, %s4414_s1 }
  0x1e   :  { %p4421_p13 = por %p4420_p12, %p4419_p11 }
  0x20   :  { %p4422_p0 = pnand %p4421_p13, %p4415_p10 }
  0x22   :  { %4425 = shalt.err (!%p4422_p0)
}
  0x23   :  { %29 = dma.hbm_to_vmem [thread:$0]  %s4909_s0, 256, %s24_s18, [#allocation3], %s4518_s10, %s4518_s10, %s4519_s11  }
  0x24   :  { %s4434_s4 = scalar_lea.vmem %s48_s20, 256  ;;  %p4439_p2 = scmp.lt.s32.totalorder %s48_s20, %s48_s20 }
  0x25   :  { %p4435_p1 = scmp.ne.s32.totalorder %s48_s20, %s4434_s4  ;;  %p4440_p3 = scmp.lt.s32.totalorder %s4434_s4, %s4434_s4 }
  0x27   :  { %p4441_p4 = por %p4440_p3, %p4439_p2 }
  0x29   :  { %p4442_p5 = pnand %p4441_p4, %p4435_p1 }
  0x2b   :  { %4445 = shalt.err (!%p4442_p5)
}
  0x2c   :  { %53 = dma.hbm_to_vmem [thread:$0]  %s4911_s2, 256, %s48_s20, [#allocation6], %s4518_s10, %s4518_s10, %s4519_s11  }
  0x2d   :  { %s4522_s25 = smov [#allocation10]  }
  0x2e   :  { %s73_s26 = sshll.u32 %s4522_s25, 4  ;;  %s74_s26 = int_to_ptr.vmem [resolvable:$true] %s73_s26 }
  0x2f   :  { %s4454_s27 = scalar_lea.vmem %s74_s26, 192  ;;  %p4459_p7 = scmp.lt.s32.totalorder %s74_s26, %s74_s26 }
  0x30   :  { %p4455_p6 = scmp.ne.s32.totalorder %s74_s26, %s4454_s27  ;;  %p4460_p8 = scmp.lt.s32.totalorder %s4454_s27, %s4454_s27 }
  0x32   :  { %p4461_p9 = por %p4460_p8, %p4459_p7 }
  0x34   :  { %p4462_p10 = pnand %p4461_p9, %p4455_p6 }
  0x36   :  { %4465 = shalt.err (!%p4462_p10)
}
  0x37   :  { %s4523_s0 = smov 16   ;;  %s4524_s28 = smov 1  }
  0x38   :  { %79 = dma.hbm_to_vmem [thread:$0]  %s4914_s5, 192, %s74_s26, [#allocation9], %s4523_s0, %s4523_s0, %s4524_s28  }
  0x39   :  { %s4525_s9 = smov [#allocation11]  }
  0x3a   :  { %s85_s12 = sshll.u32 %s4525_s9, 4  ;;  %s86_s12 = int_to_ptr.vmem [resolvable:$true] %s85_s12 }
  0x3b   :  { %s4474_s2 = scalar_lea.vmem %s86_s12, 512  ;;  %p4479_p12 = scmp.lt.s32.totalorder %s86_s12, %s86_s12 }
  0x3c   :  { %p4475_p11 = scmp.ne.s32.totalorder %s86_s12, %s4474_s2  ;;  %p4480_p13 = scmp.lt.s32.totalorder %s4474_s2, %s4474_s2 }
  0x3e   :  { %p4481_p0 = por %p4480_p13, %p4479_p12 }
  0x40   :  { %p4482_p1 = pnand %p4481_p0, %p4475_p11 }
  0x42   :  { %4485 = shalt.err (!%p4482_p1)
}
  0x43   :  { %91 = dma.hbm_to_vmem [thread:$0]  %s4915_s6, 512, %s86_s12, [#allocation12], %s4518_s10, %s4518_s10, %s4519_s11  }
  0x44   :  { %4506 = dma.done.wait [#allocation3], 256  }
  0x45   :  { %4507 = vsyncadd [#allocation3], 4294967040 }
  0x46   :  { %4508 = dma.done.wait [#allocation6], 512  }
  0x47   :  { %4509 = vsyncadd [#allocation6], 4294966784 }
  0x48   :  { %4510 = dma.done.wait [#allocation9], 1728  }
  0x49   :  { %4511 = vsyncadd [#allocation9], 4294965568 }
  0x4a   :  { %4512 = dma.done.wait [#allocation12], 512  }
  0x4b   :  { %4513 = vsyncadd [#allocation12], 4294966784  ;;  %v4526_v0 = vmov 0.0   ;;  %vm4527_vm0 = vmmov 0   ;;  %vm146_vm1 = vcmask 261120   ;;  %v114_v1 = vld [vmem:[#allocation8] sm:$0xff] }
  0x4c   :  { %4080 = vmatprep.subr.mxu0 %v4526_v0  ;;  %4085 = vmatprep.subr.mxu1 %v4526_v0  ;;  %v115_v2 = vld [vmem:[#allocation8 + $0x8] sm:$0xff]  ;;  %v112_v3 = vld [vmem:[#allocation2] sm:$0xff]  ;;  %v117_v5 = vld [vmem:[#allocation8 + $0x18] sm:$0xff]  ;;  %vm1953_vm2 = vcmask 64512  }
  0x4d   :  { %4082 = vmatprep.mubr.msk.f32.mxu0 %vm4527_vm0, %v4526_v0  ;;  %4087 = vmatprep.mubr.msk.f32.mxu1 %vm4527_vm0, %v4526_v0  ;;  %v116_v4 = vld [vmem:[#allocation8 + $0x10] sm:$0xff]  ;;  %v113_v6 = vld [vmem:[#allocation2 + $0x8] sm:$0xff]  ;;  %v728_v7 = vld [vmem:[#allocation8 + $0x20] sm:$0xff] }
  0x4e   :  { %4081 = vmatpush3.xpose.msk.msra.mxu0 %vm146_vm1, %v114_v1  ;;  %4086 = vmatpush3.xpose.msk.msra.mxu1 %vm146_vm1, %v115_v2  ;;  %v729_v8 = vld [vmem:[#allocation8 + $0x28] sm:$0xff]  ;;  %v725_v9 = vld [vmem:[#allocation5] sm:$0xff]  ;;  %v730_v10 = vld [vmem:[#allocation8 + $0x30] sm:$0xff] }
  0x4f   :  { %4090 = vmatprep.subr.mxu0 %v4526_v0  ;;  %4095 = vmatprep.subr.mxu1 %v4526_v0  ;;  %v731_v11 = vld [vmem:[#allocation8 + $0x38] sm:$0xff]  ;;  %v726_v12 = vld [vmem:[#allocation5 + $0x8] sm:$0xff]  ;;  %v1342_v13 = vld [vmem:[#allocation8 + $0x40] sm:$0xff] }
  0x50   :  { %v1343_v14 = vld [vmem:[#allocation8 + $0x48] sm:$0xff]  ;;  %v1339_v15 = vld [vmem:[#allocation7] sm:$0xff]  ;;  %v1345_v17 = vld [vmem:[#allocation8 + $0x58] sm:$0xff] }
  0x51   :  { %4083 = vmatmul.mubr.msk.f32.vlgmr.msra.gmra.mxu0 %vm146_vm1, %v112_v3  ;;  %4088 = vmatmul.mubr.msk.f32.vlgmr.msra.gmra.mxu1 %vm146_vm1, %v112_v3  ;;  %v1344_v16 = vld [vmem:[#allocation8 + $0x50] sm:$0xff]  ;;  %v1340_v18 = vld [vmem:[#allocation7 + $0x8] sm:$0xff]  ;;  %v3911_v35 = vld [vmem:[#allocation10 + $0x4] ss:$0 sm:$0xff] }
  0x52   :  { %4091 = vmatpush3.xpose.msk.msra.mxu0 %vm146_vm1, %v116_v4  ;;  %4096 = vmatpush3.xpose.msk.msra.mxu1 %vm146_vm1, %v117_v5  ;;  %v3912_v36 = vld [vmem:[#allocation10 + $0x5] ss:$0 sm:$0xff]  ;;  %v3891_v39 = vld [vmem:[#allocation10] ss:$0 sm:$0xff]  ;;  %v3892_v40 = vld [vmem:[#allocation10 + $0x1] ss:$0 sm:$0xff] }
  0x53   :  { %4092 = vmatprep.mubr.msk.f32.mxu0 %vm4527_vm0, %v4526_v0  ;;  %4097 = vmatprep.mubr.msk.f32.mxu1 %vm4527_vm0, %v4526_v0  ;;  %v3913_v45 = vld [vmem:[#allocation10 + $0x6] ss:$0 sm:$0xff]  ;;  %v3914_v46 = vld [vmem:[#allocation10 + $0x7] ss:$0 sm:$0xff]  ;;  %v3893_v51 = vld [vmem:[#allocation10 + $0x2] ss:$0 sm:$0xff] }
  0x54   :  { %4100 = vmatprep.subr.mxu0 %v4526_v0  ;;  %4105 = vmatprep.subr.mxu1 %v4526_v0  ;;  %v3894_v52 = vld [vmem:[#allocation10 + $0x3] ss:$0 sm:$0xff] }
  0x55   :  { %4093 = vmatmul.mubr.msk.f32.vlgmr.msra.gmra.mxu0 %vm146_vm1, %v112_v3  ;;  %4098 = vmatmul.mubr.msk.f32.vlgmr.msra.gmra.mxu1 %vm146_vm1, %v112_v3 }
  0x56   :  { %4101 = vmatpush3.xpose.msk.msra.mxu0 %vm146_vm1, %v114_v1  ;;  %4106 = vmatpush3.xpose.msk.msra.mxu1 %vm146_vm1, %v115_v2 }
  0x57   :  { %4102 = vmatprep.mubr.msk.f32.mxu0 %vm4527_vm0, %v4526_v0  ;;  %4107 = vmatprep.mubr.msk.f32.mxu1 %vm4527_vm0, %v4526_v0 }
  0x58   :  { %4110 = vmatprep.subr.mxu0 %v4526_v0  ;;  %4115 = vmatprep.subr.mxu1 %v4526_v0 }
  0x59   :  { %4103 = vmatmul.mubr.msk.f32.vlgmr.msra.gmra.mxu0 %vm146_vm1, %v113_v6  ;;  %4108 = vmatmul.mubr.msk.f32.vlgmr.msra.gmra.mxu1 %vm146_vm1, %v113_v6 }
  0x5a   :  { %4111 = vmatpush3.xpose.msk.msra.mxu0 %vm146_vm1, %v116_v4  ;;  %4116 = vmatpush3.xpose.msk.msra.mxu1 %vm146_vm1, %v117_v5 }
  0x5b   :  { %4112 = vmatprep.mubr.msk.f32.mxu0 %vm4527_vm0, %v4526_v0  ;;  %4117 = vmatprep.mubr.msk.f32.mxu1 %vm4527_vm0, %v4526_v0 }
  0x5c   :  { %4120 = vmatprep.subr.mxu0 %v4526_v0  ;;  %4125 = vmatprep.subr.mxu1 %v4526_v0 }
  0x5d   :  { %4113 = vmatmul.mubr.msk.f32.vlgmr.msra.gmra.mxu0 %vm146_vm1, %v113_v6  ;;  %4118 = vmatmul.mubr.msk.f32.vlgmr.msra.gmra.mxu1 %vm146_vm1, %v113_v6 }
  0x5e   :  { %4121 = vmatpush3.xpose.msk.msra.mxu0 %vm146_vm1, %v728_v7  ;;  %4126 = vmatpush3.xpose.msk.msra.mxu1 %vm146_vm1, %v729_v8 }
  0x5f   :  { %4122 = vmatprep.mubr.msk.f32.mxu0 %vm4527_vm0, %v4526_v0  ;;  %4127 = vmatprep.mubr.msk.f32.mxu1 %vm4527_vm0, %v4526_v0 }
  0x60   :  { %4130 = vmatprep.subr.mxu0 %v4526_v0  ;;  %4135 = vmatprep.subr.mxu1 %v4526_v0 }
  0x61   :  { %4123 = vmatmul.mubr.msk.f32.vlgmr.msra.gmra.mxu0 %vm146_vm1, %v725_v9  ;;  %4128 = vmatmul.mubr.msk.f32.vlgmr.msra.gmra.mxu1 %vm146_vm1, %v725_v9 }
  0x62   :  { %4131 = vmatpush3.xpose.msk.msra.mxu0 %vm146_vm1, %v730_v10  ;;  %4136 = vmatpush3.xpose.msk.msra.mxu1 %vm146_vm1, %v731_v11 }
  0x63   :  { %4132 = vmatprep.mubr.msk.f32.mxu0 %vm4527_vm0, %v4526_v0  ;;  %4137 = vmatprep.mubr.msk.f32.mxu1 %vm4527_vm0, %v4526_v0 }
  0x64   :  { %4140 = vmatprep.subr.mxu0 %v4526_v0  ;;  %4145 = vmatprep.subr.mxu1 %v4526_v0 }
  0x65   :  { %4133 = vmatmul.mubr.msk.f32.vlgmr.msra.gmra.mxu0 %vm146_vm1, %v725_v9  ;;  %4138 = vmatmul.mubr.msk.f32.vlgmr.msra.gmra.mxu1 %vm146_vm1, %v725_v9 }
  0x66   :  { %4141 = vmatpush3.xpose.msk.msra.mxu0 %vm146_vm1, %v728_v7  ;;  %4146 = vmatpush3.xpose.msk.msra.mxu1 %vm146_vm1, %v729_v8 }
  0x67   :  { %4142 = vmatprep.mubr.msk.f32.mxu0 %vm4527_vm0, %v4526_v0  ;;  %4147 = vmatprep.mubr.msk.f32.mxu1 %vm4527_vm0, %v4526_v0 }
  0x68   :  { %4150 = vmatprep.subr.mxu0 %v4526_v0  ;;  %4155 = vmatprep.subr.mxu1 %v4526_v0 }
  0x69   :  { %4143 = vmatmul.mubr.msk.f32.vlgmr.msra.gmra.mxu0 %vm146_vm1, %v726_v12  ;;  %4148 = vmatmul.mubr.msk.f32.vlgmr.msra.gmra.mxu1 %vm146_vm1, %v726_v12 }
  0x6a   :  { %4151 = vmatpush3.xpose.msk.msra.mxu0 %vm146_vm1, %v730_v10  ;;  %4156 = vmatpush3.xpose.msk.msra.mxu1 %vm146_vm1, %v731_v11 }
  0x6b   :  { %4152 = vmatprep.mubr.msk.f32.mxu0 %vm4527_vm0, %v4526_v0  ;;  %4157 = vmatprep.mubr.msk.f32.mxu1 %vm4527_vm0, %v4526_v0 }
  0x6c   :  { %4160 = vmatprep.subr.mxu0 %v4526_v0  ;;  %4165 = vmatprep.subr.mxu1 %v4526_v0 }
  0x6d   :  { %4153 = vmatmul.mubr.msk.f32.vlgmr.msra.gmra.mxu0 %vm146_vm1, %v726_v12  ;;  %4158 = vmatmul.mubr.msk.f32.vlgmr.msra.gmra.mxu1 %vm146_vm1, %v726_v12  ;;  %v3931_v12 = vld [vmem:[#allocation10 + $0x8] ss:$0 sm:$0xff] }
  0x6e   :  { %4162 = vmatprep.mubr.msk.f32.mxu0 %vm4527_vm0, %v4526_v0  ;;  %4167 = vmatprep.mubr.msk.f32.mxu1 %vm4527_vm0, %v4526_v0 }
  0x6f   :  { %4161 = vmatpush3.xpose.msk.msra.mxu0 %vm146_vm1, %v1342_v13  ;;  %4166 = vmatpush3.xpose.msk.msra.mxu1 %vm146_vm1, %v1343_v14 }
  0x70   :  { %4170 = vmatprep.subr.mxu0 %v4526_v0  ;;  %4175 = vmatprep.subr.mxu1 %v4526_v0 }
  0x72   :  { %4163 = vmatmul.mubr.msk.f32.vlgmr.msra.gmra.mxu0 %vm146_vm1, %v1339_v15  ;;  %4168 = vmatmul.mubr.msk.f32.vlgmr.msra.gmra.mxu1 %vm146_vm1, %v1339_v15 }
  0x73   :  { %4171 = vmatpush3.xpose.msk.msra.mxu0 %vm146_vm1, %v1344_v16  ;;  %4172 = vmatprep.mubr.msk.f32.mxu0 %vm4527_vm0, %v4526_v0 }
  0x74   :  { %4180 = vmatprep.subr.mxu0 %v4526_v0  ;;  %4176 = vmatpush3.xpose.msk.msra.mxu1 %vm146_vm1, %v1345_v17 }
  0x75   :  { %4177 = vmatprep.mubr.msk.f32.mxu1 %vm4527_vm0, %v4526_v0  ;;  %4185 = vmatprep.subr.mxu1 %v4526_v0 }
  0x76   :  { %4173 = vmatmul.mubr.msk.f32.vlgmr.msra.gmra.mxu0 %vm146_vm1, %v1339_v15 }
  0x77   :  { %4181 = vmatpush3.xpose.msk.msra.mxu0 %vm146_vm1, %v1342_v13  ;;  %4182 = vmatprep.mubr.msk.f32.mxu0 %vm4527_vm0, %v4526_v0 }
  0x78   :  { %4178 = vmatmul.mubr.msk.f32.vlgmr.msra.gmra.mxu1 %vm146_vm1, %v1339_v15  ;;  %4190 = vmatprep.subr.mxu0 %v4526_v0 }
  0x79   :  { %4186 = vmatpush3.xpose.msk.msra.mxu1 %vm146_vm1, %v1343_v14  ;;  %4187 = vmatprep.mubr.msk.f32.mxu1 %vm4527_vm0, %v4526_v0  ;;  %v3932_v14 = vld [vmem:[#allocation10 + $0x9] ss:$0 sm:$0xff] }
  0x7a   :  { %4183 = vmatmul.mubr.msk.f32.vlgmr.msra.gmra.mxu0 %vm146_vm1, %v1340_v18  ;;  %4195 = vmatprep.subr.mxu1 %v4526_v0 }
  0x7b   :  { %4191 = vmatpush3.xpose.msk.msra.mxu0 %vm146_vm1, %v1344_v16  ;;  %4192 = vmatprep.mubr.msk.f32.mxu0 %vm4527_vm0, %v4526_v0 }
  0x7c   :  { %4188 = vmatmul.mubr.msk.f32.vlgmr.msra.gmra.mxu1 %vm146_vm1, %v1340_v18  ;;  %4200 = vmatprep.subr.mxu0 %v4526_v0 }
  0x7d   :  { %4196 = vmatpush3.xpose.msk.msra.mxu1 %vm146_vm1, %v1345_v17  ;;  %4197 = vmatprep.mubr.msk.f32.mxu1 %vm4527_vm0, %v4526_v0 }
  0x7e   :  { %4193 = vmatmul.mubr.msk.f32.vlgmr.msra.gmra.mxu0 %vm146_vm1, %v1340_v18  ;;  %4205 = vmatprep.subr.mxu1 %v4526_v0 }
  0x7f   :  { %4202 = vmatprep.mubr.msk.f32.mxu0 %vm4527_vm0, %v4526_v0 }
  0x80   :  { %4198 = vmatmul.mubr.msk.f32.vlgmr.msra.gmra.mxu1 %vm146_vm1, %v1340_v18 }
  0x81   :  { %4207 = vmatprep.mubr.msk.f32.mxu1 %vm4527_vm0, %v4526_v0 }
 0x111   :  { %v219_v19 = vpop.f32.mrf.mxu0  ;;  %v292_v20 = vpop.f32.mrf.mxu1 }
 0x112   :  { %v220_v47 = vadd.f32 %v3891_v39, %v219_v19  ;;  %v293_v48 = vadd.f32 %v3892_v40, %v292_v20 }
 0x113   :  { %v4084_v21 = vpop.f32.mrf.mxu0  ;;  %v4089_v22 = vpop.f32.mrf.mxu1 }
 0x115   :  { %v365_v23 = vpop.f32.mrf.mxu0  ;;  %v438_v24 = vpop.f32.mrf.mxu1 }
 0x116   :  { %v366_v57 = vadd.f32 %v3893_v51, %v365_v23  ;;  %v439_v58 = vadd.f32 %v3894_v52, %v438_v24 }
 0x117   :  { %v4094_v25 = vpop.f32.mrf.mxu0  ;;  %v4099_v26 = vpop.f32.mrf.mxu1 }
 0x119   :  { %v511_v27 = vpop.f32.mrf.mxu0  ;;  %v581_v28 = vpop.f32.mrf.mxu1 }
 0x11a   :  { %v512_v2 = vadd.f32 %v3891_v39, %v511_v27  ;;  %v582_v3 = vadd.f32 %v3892_v40, %v581_v28  ;;  %v2563_v40 = vld [vmem:[%s4912_s3 + $0x1] sm:$0x1] }
 0x11b   :  { %v4104_v29 = vpop.f32.mrf.mxu0  ;;  %v4109_v30 = vpop.f32.mrf.mxu1  ;;  %vm2565_vm4 = vcmp.ge.f32.partialorder %v2563_v40, 0.5 }
 0x11d   :  { %v4734_v31 = vpop.f32.mrf.mxu0  ;;  %v4736_v32 = vpop.f32.mrf.mxu1 }
 0x11e   :  { %v652_v10 = vadd.f32 %v3893_v51, %v4734_v31  ;;  %v722_v11 = vadd.f32 %v3894_v52, %v4736_v32 }
 0x11f   :  { %v4114_v33 = vpop.f32.mrf.mxu0  ;;  %v4119_v34 = vpop.f32.mrf.mxu1 }
 0x120   :  { %v2568_v34 = vlaneseq }
 0x121   :  { %v833_v37 = vpop.f32.mrf.mxu0  ;;  %v906_v38 = vpop.f32.mrf.mxu1 }
 0x122   :  { %v834_v41 = vadd.f32 %v3911_v35, %v833_v37  ;;  %v907_v42 = vadd.f32 %v3912_v36, %v906_v38  ;;  %v4528_v38 = vmov 0  }
 0x123   :  { %v4124_v43 = vpop.f32.mrf.mxu0  ;;  %v4129_v44 = vpop.f32.mrf.mxu1 }
 0x124   :  { %4201 = vmatpush3.xpose.msk.msra.mxu0 %vm1953_vm2, %v834_v41  ;;  %4206 = vmatpush3.xpose.msk.msra.mxu1 %vm1953_vm2, %v907_v42  ;;  %v2567_v42 = vsel %vm2565_vm4, 1, %v4528_v38 }
 0x125   :  { %v979_v49 = vpop.f32.mrf.mxu0  ;;  %v1052_v50 = vpop.f32.mrf.mxu1  ;;  %4210 = vmatprep.subr.mxu0 %v4526_v0  ;;  %4215 = vmatprep.subr.mxu1 %v4526_v0 }
 0x126   :  { %v980_v53 = vadd.f32 %v3913_v45, %v979_v49  ;;  %v1053_v54 = vadd.f32 %v3914_v46, %v1052_v50 }
 0x127   :  { %v4134_v55 = vpop.f32.mrf.mxu0  ;;  %v4139_v56 = vpop.f32.mrf.mxu1  ;;  %4203 = vmatmul.mubr.msk.f32.vlgmr.msra.gmra.mxu0 %vm1953_vm2, %v220_v47  ;;  %4208 = vmatmul.mubr.msk.f32.vlgmr.msra.gmra.mxu1 %vm1953_vm2, %v293_v48 }
 0x128   :  { %4211 = vmatpush3.xpose.msk.msra.mxu0 %vm1953_vm2, %v980_v53  ;;  %4216 = vmatpush3.xpose.msk.msra.mxu1 %vm1953_vm2, %v1053_v54 }
 0x129   :  { %v1125_v59 = vpop.f32.mrf.mxu0  ;;  %v1195_v60 = vpop.f32.mrf.mxu1  ;;  %4212 = vmatprep.mubr.msk.f32.mxu0 %vm4527_vm0, %v4526_v0  ;;  %4217 = vmatprep.mubr.msk.f32.mxu1 %vm4527_vm0, %v4526_v0 }
 0x12a   :  { %v1126_v61 = vadd.f32 %v3911_v35, %v1125_v59  ;;  %v1196_v62 = vadd.f32 %v3912_v36, %v1195_v60  ;;  %4220 = vmatprep.subr.mxu0 %v4526_v0  ;;  %4225 = vmatprep.subr.mxu1 %v4526_v0  ;;  %v2562_v35 = vld [vmem:[%s4912_s3] sm:$0x1]  ;;  %v2569_v36 = vshrl.u32 %v2568_v34, 7 }
 0x12b   :  { %v4144_v63 = vpop.f32.mrf.mxu0  ;;  %v4149_v1 = vpop.f32.mrf.mxu1  ;;  %4213 = vmatmul.mubr.msk.f32.vlgmr.msra.gmra.mxu0 %vm1953_vm2, %v366_v57  ;;  %4218 = vmatmul.mubr.msk.f32.vlgmr.msra.gmra.mxu1 %vm1953_vm2, %v439_v58  ;;  %vm2564_vm3 = vcmp.ge.f32.partialorder %v2562_v35, 0.5 }
 0x12c   :  { %4221 = vmatpush3.xpose.msk.msra.mxu0 %vm1953_vm2, %v1126_v61  ;;  %4226 = vmatpush3.xpose.msk.msra.mxu1 %vm1953_vm2, %v1196_v62  ;;  %v2570_v37 = vsub.s32 0, %v2569_v36  ;;  %v2566_v39 = vsel %vm2564_vm3, 1, %v4528_v38 }
 0x12d   :  { %v1265_v4 = vpop.f32.mrf.mxu0  ;;  %v1335_v5 = vpop.f32.mrf.mxu1  ;;  %4222 = vmatprep.mubr.msk.f32.mxu0 %vm4527_vm0, %v4526_v0  ;;  %4227 = vmatprep.mubr.msk.f32.mxu1 %vm4527_vm0, %v4526_v0 }
 0x12e   :  { %v1266_v6 = vadd.f32 %v3913_v45, %v1265_v4  ;;  %v1336_v7 = vadd.f32 %v3914_v46, %v1335_v5  ;;  %4230 = vmatprep.subr.mxu0 %v4526_v0  ;;  %4235 = vmatprep.subr.mxu1 %v4526_v0  ;;  %v2571_v41 = vrot.slane %v2566_v39, %v2570_v37 }
 0x12f   :  { %v4154_v8 = vpop.f32.mrf.mxu0  ;;  %4223 = vmatmul.mubr.msk.f32.vlgmr.msra.gmra.mxu0 %vm1953_vm2, %v512_v2  ;;  %4228 = vmatmul.mubr.msk.f32.vlgmr.msra.gmra.mxu1 %vm1953_vm2, %v582_v3  ;;  %v4159_v9 = vpop.f32.mrf.mxu1  ;;  %v2575_v49 = vrot.slane %v2567_v42, %v2570_v37 }
 0x130   :  { %4231 = vmatpush3.xpose.msk.msra.mxu0 %vm1953_vm2, %v1266_v6  ;;  %4236 = vmatpush3.xpose.msk.msra.mxu1 %vm1953_vm2, %v1336_v7  ;;  %vm2576_vm5 = vcmp.eq.s32.totalorder %v2571_v41, 1 }
 0x131   :  { %4232 = vmatprep.mubr.msk.f32.mxu0 %vm4527_vm0, %v4526_v0  ;;  %4237 = vmatprep.mubr.msk.f32.mxu1 %vm4527_vm0, %v4526_v0  ;;  %vm2577_vm6 = vcmp.eq.s32.totalorder %v2575_v49, 1 }
 0x132   :  { %4240 = vmatprep.subr.mxu0 %v4526_v0  ;;  %4245 = vmatprep.subr.mxu1 %v4526_v0  ;;  %v1447_v13 = vpop.f32.mrf.mxu0  ;;  %v1520_v16 = vpop.f32.mrf.mxu1 }
 0x133   :  { %4233 = vmatmul.mubr.msk.f32.vlgmr.msra.gmra.mxu0 %vm1953_vm2, %v652_v10  ;;  %4238 = vmatmul.mubr.msk.f32.vlgmr.msra.gmra.mxu1 %vm1953_vm2, %v722_v11  ;;  %v1448_v15 = vadd.f32 %v3931_v12, %v1447_v13  ;;  %v1521_v18 = vadd.f32 %v3932_v14, %v1520_v16 }
 0x134   :  { %4242 = vmatprep.mubr.msk.f32.mxu0 %vm4527_vm0, %v4526_v0  ;;  %4247 = vmatprep.mubr.msk.f32.mxu1 %vm4527_vm0, %v4526_v0  ;;  %v4164_v17 = vpop.f32.mrf.mxu0  ;;  %v4169_v19 = vpop.f32.mrf.mxu1 }
 0x135   :  { %4241 = vmatpush3.msra.mxu0 %v1448_v15  ;;  %4246 = vmatpush3.msra.mxu1 %v1521_v18 }
 0x136   :  { %v4780_v20 = vpop.f32.mrf.mxu0  ;;  %4250 = vmatprep.subr.mxu0 %v4526_v0  ;;  %4255 = vmatprep.subr.mxu1 %v4526_v0 }
 0x138   :  { %v4783_v21 = vpop.f32.mrf.mxu1  ;;  %v4174_v22 = vpop.f32.mrf.mxu0 }
 0x13a   :  { %v4179_v23 = vpop.f32.mrf.mxu1  ;;  %v1739_v24 = vpop.f32.mrf.mxu0 }
 0x13b   :  { %v4786_v25 = vadd.f32 %v3931_v12, %v1739_v24 }
 0x13c   :  { %v1809_v26 = vpop.f32.mrf.mxu1  ;;  %v4184_v27 = vpop.f32.mrf.mxu0 }
 0x13d   :  { %v4788_v28 = vadd.f32 %v3932_v14, %v1809_v26 }
 0x13e   :  { %v4189_v29 = vpop.f32.mrf.mxu1  ;;  %v4790_v30 = vpop.f32.mrf.mxu0 }
 0x140   :  { %v4792_v31 = vpop.f32.mrf.mxu1  ;;  %v4194_v32 = vpop.f32.mrf.mxu0 }
 0x142   :  { %v4199_v33 = vpop.f32.mrf.mxu1 }
 0x1e7   :  { %v2026_v43 = vpop.f32.mrf.mxu0  ;;  %v2102_v44 = vpop.f32.mrf.mxu1 }
 0x1e8   :  { %v2578_v45 = vsel %vm2576_vm5, %v2026_v43, -1e+09  ;;  %v2579_v50 = vsel %vm2576_vm5, %v2102_v44, -1e+09 }
 0x1e9   :  { %v4204_v46 = vpop.f32.mrf.mxu0  ;;  %v4209_v47 = vpop.f32.mrf.mxu1  ;;  %v2586_v48 = vsel %vm1953_vm2, %v2578_v45, -inf  ;;  %v2589_v56 = vsel %vm1953_vm2, %v2579_v50, -inf }
 0x1ea   :  { %2587 = vmax.xlane.f32.xlu0 %v2586_v48 }
 0x1eb   :  { %v2178_v51 = vpop.f32.mrf.mxu0  ;;  %v2254_v52 = vpop.f32.mrf.mxu1 }
 0x1ec   :  { %v2580_v53 = vsel %vm2576_vm5, %v2178_v51, -1e+09  ;;  %v2581_v58 = vsel %vm2576_vm5, %v2254_v52, -1e+09 }
 0x1ed   :  { %v4214_v54 = vpop.f32.mrf.mxu0  ;;  %v4219_v55 = vpop.f32.mrf.mxu1  ;;  %v2592_v57 = vsel %vm1953_vm2, %v2580_v53, -inf  ;;  %v2595_v1 = vsel %vm1953_vm2, %v2581_v58, -inf }
 0x1ee   :  { %2590 = vmax.xlane.f32.xlu0 %v2589_v56  ;;  %2593 = vmax.xlane.f32.xlu1 %v2592_v57 }
 0x1ef   :  { %v2330_v59 = vpop.f32.mrf.mxu0  ;;  %v2406_v60 = vpop.f32.mrf.mxu1 }
 0x1f0   :  { %v2582_v61 = vsel %vm2577_vm6, %v2330_v59, -1e+09  ;;  %v2583_v3 = vsel %vm2577_vm6, %v2406_v60, -1e+09 }
 0x1f1   :  { %v4224_v62 = vpop.f32.mrf.mxu0  ;;  %v4229_v63 = vpop.f32.mrf.mxu1  ;;  %v2598_v2 = vsel %vm1953_vm2, %v2582_v61, -inf  ;;  %v2601_v9 = vsel %vm1953_vm2, %v2583_v3, -inf }
 0x1f2   :  { %2596 = vmax.xlane.f32.xlu1 %v2595_v1  ;;  %2599 = vmax.xlane.f32.xlu0 %v2598_v2  ;;  %v3933_v2 = vld [vmem:[#allocation10 + $0xa] ss:$0 sm:$0xff] }
 0x1f3   :  { %v2482_v4 = vpop.f32.mrf.mxu0  ;;  %v2558_v5 = vpop.f32.mrf.mxu1 }
 0x1f4   :  { %v2584_v6 = vsel %vm2577_vm6, %v2482_v4, -1e+09  ;;  %v2585_v11 = vsel %vm2577_vm6, %v2558_v5, -1e+09 }
 0x1f5   :  { %v4234_v7 = vpop.f32.mrf.mxu0  ;;  %v4239_v8 = vpop.f32.mrf.mxu1  ;;  %v2604_v10 = vsel %vm1953_vm2, %v2584_v6, -inf  ;;  %v2607_v12 = vsel %vm1953_vm2, %v2585_v11, -inf }
 0x1f6   :  { %2602 = vmax.xlane.f32.xlu1 %v2601_v9  ;;  %2605 = vmax.xlane.f32.xlu0 %v2604_v10  ;;  %v3934_v8 = vld [vmem:[#allocation10 + $0xb] ss:$0 sm:$0xff] }
 0x1fa   :  { %2608 = vmax.xlane.f32.xlu1 %v2607_v12  ;;  %v1667_v12 = vadd.f32 %v3934_v8, %v4783_v21 }
 0x273   :  { %v2588_v13 = vpop.xlane.xlu0 %2587 }
 0x274   :  { %v2610_v14 = vsub.f32 %v2578_v45, %v2588_v13 }
 0x276   :  { %v2618_v15 = vmul.f32 1.442695, %v2610_v14 }
 0x277   :  { %v2591_v16 = vpop.xlane.xlu0 %2590  ;;  %v2594_v17 = vpop.xlane.xlu1 %2593 }
 0x278   :  { %4334 = vpow2.f32 %v2618_v15  ;;  %v2611_v18 = vsub.f32 %v2579_v50, %v2591_v16  ;;  %v2612_v19 = vsub.f32 %v2580_v53, %v2594_v17  ;;  %v1880_v16 = vadd.f32 %v3933_v2, %v4790_v30 }
 0x27a   :  { %v2620_v22 = vmul.f32 1.442695, %v2611_v18  ;;  %v2622_v23 = vmul.f32 1.442695, %v2612_v19  ;;  %v1950_v19 = vadd.f32 %v3934_v8, %v4792_v31  ;;  %v3258_v31 = vld [vmem:[#allocation11] sm:$0xff] }
 0x27b   :  { %v2597_v24 = vpop.xlane.xlu1 %2596  ;;  %v2600_v26 = vpop.xlane.xlu0 %2599 }
 0x27c   :  { %4336 = vpow2.f32 %v2620_v22  ;;  %v2613_v27 = vsub.f32 %v2581_v58, %v2597_v24  ;;  %v2614_v29 = vsub.f32 %v2582_v61, %v2600_v26  ;;  %v3260_v24 = vld [vmem:[#allocation11 + $0x10] sm:$0xff] }
 0x27d   :  { %4338 = vpow2.f32 %v2622_v23  ;;  %v3259_v23 = vld [vmem:[#allocation11 + $0x8] sm:$0xff] }
 0x27e   :  { %v2624_v32 = vmul.f32 1.442695, %v2613_v27  ;;  %v2626_v33 = vmul.f32 1.442695, %v2614_v29  ;;  %v3261_v29 = vld [vmem:[#allocation11 + $0x18] sm:$0xff] }
 0x27f   :  { %v2603_v34 = vpop.xlane.xlu1 %2602  ;;  %v2606_v35 = vpop.xlane.xlu0 %2605 }
 0x280   :  { %4340 = vpow2.f32 %v2624_v32  ;;  %v2615_v36 = vsub.f32 %v2583_v3, %v2603_v34  ;;  %v2616_v37 = vsub.f32 %v2584_v6, %v2606_v35  ;;  %v1594_v6 = vadd.f32 %v3933_v2, %v4780_v20 }
 0x281   :  { %4342 = vpow2.f32 %v2626_v33 }
 0x282   :  { %v2628_v38 = vmul.f32 1.442695, %v2615_v36  ;;  %v2630_v39 = vmul.f32 1.442695, %v2616_v37 }
 0x283   :  { %v2609_v40 = vpop.xlane.xlu1 %2608 }
 0x284   :  { %4344 = vpow2.f32 %v2628_v38  ;;  %v2617_v41 = vsub.f32 %v2585_v11, %v2609_v40 }
 0x285   :  { %v4335_v42 = vpop.eup %4334  ;;  %4346 = vpow2.f32 %v2630_v39 }
 0x286   :  { %v2632_v43 = vmul.f32 1.442695, %v2617_v41  ;;  %v2634_v44 = vsel %vm1953_vm2, %v4335_v42, 0.0 }
 0x287   :  { %2635 = vadd.xlane.f32.xlu0 %v2634_v44 }
 0x288   :  { %4348 = vpow2.f32 %v2632_v43 }
 0x289   :  { %v4337_v45 = vpop.eup %4336 }
 0x28a   :  { %v4339_v46 = vpop.eup %4338  ;;  %v2637_v47 = vsel %vm1953_vm2, %v4337_v45, 0.0 }
 0x28b   :  { %2638 = vadd.xlane.f32.xlu1 %v2637_v47  ;;  %v2640_v48 = vsel %vm1953_vm2, %v4339_v46, 0.0 }
 0x28c   :  { %2641 = vadd.xlane.f32.xlu0 %v2640_v48 }
 0x28d   :  { %v4341_v49 = vpop.eup %4340 }
 0x28e   :  { %v4343_v50 = vpop.eup %4342  ;;  %v2643_v51 = vsel %vm1953_vm2, %v4341_v49, 0.0 }
 0x28f   :  { %2644 = vadd.xlane.f32.xlu1 %v2643_v51  ;;  %v2646_v52 = vsel %vm1953_vm2, %v4343_v50, 0.0 }
 0x290   :  { %2647 = vadd.xlane.f32.xlu0 %v2646_v52 }
 0x291   :  { %v4345_v53 = vpop.eup %4344 }
 0x292   :  { %v4347_v54 = vpop.eup %4346  ;;  %v2649_v55 = vsel %vm1953_vm2, %v4345_v53, 0.0 }
 0x293   :  { %2650 = vadd.xlane.f32.xlu1 %v2649_v55  ;;  %v2652_v56 = vsel %vm1953_vm2, %v4347_v54, 0.0 }
 0x294   :  { %2653 = vadd.xlane.f32.xlu0 %v2652_v56 }
 0x295   :  { %v4823_v57 = vpop.eup %4348 }
 0x296   :  { %v2655_v58 = vsel %vm1953_vm2, %v4823_v57, 0.0 }
 0x297   :  { %2656 = vadd.xlane.f32.xlu1 %v2655_v58  ;;  %v3983_v58 = vld [vmem:[%s4916_s7] ss:$0 sm:$0xff]  ;;  %s4529_s7 = smov [#allocation13]  }
 0x298   :  { %s3876_s18 = sshll.u32 %s4529_s7, 4  ;;  %s3877_s18 = int_to_ptr.vmem [resolvable:$true] %s3876_s18 }
 0x299   :  { %s4486_s19 = scalar_lea.vmem %s3877_s18, 256  ;;  %p4491_p3 = scmp.lt.s32.totalorder %s3877_s18, %s3877_s18 }
 0x29a   :  { %p4487_p2 = scmp.ne.s32.totalorder %s3877_s18, %s4486_s19  ;;  %p4492_p4 = scmp.lt.s32.totalorder %s4486_s19, %s4486_s19 }
 0x29c   :  { %p4493_p5 = por %p4492_p4, %p4491_p3 }
 0x29e   :  { %p4494_p6 = pnand %p4493_p5, %p4487_p2 }
 0x310   :  { %v2636_v59 = vpop.xlane.xlu0 %2635 }
 0x311   :  { %4350 = vrcp.f32 %v2636_v59 }
 0x314   :  { %v2639_v60 = vpop.xlane.xlu1 %2638 }
 0x315   :  { %4352 = vrcp.f32 %v2639_v60  ;;  %v2642_v61 = vpop.xlane.xlu0 %2641 }
 0x316   :  { %4354 = vrcp.f32 %v2642_v61 }
 0x318   :  { %v2645_v62 = vpop.xlane.xlu1 %2644 }
 0x319   :  { %4356 = vrcp.f32 %v2645_v62  ;;  %v2648_v63 = vpop.xlane.xlu0 %2647 }
 0x31a   :  { %4358 = vrcp.f32 %v2648_v63 }
 0x31c   :  { %v2651_v1 = vpop.xlane.xlu1 %2650 }
 0x31d   :  { %4360 = vrcp.f32 %v2651_v1  ;;  %v2654_v3 = vpop.xlane.xlu0 %2653 }
 0x31e   :  { %v4351_v4 = vpop.eup %4350  ;;  %4362 = vrcp.f32 %v2654_v3 }
 0x31f   :  { %v2666_v5 = vmul.f32 %v4351_v4, %v4335_v42 }
 0x320   :  { %v2657_v7 = vpop.xlane.xlu1 %2656 }
 0x321   :  { %4364 = vrcp.f32 %v2657_v7  ;;  %4243 = vmatmul.mubr.msk.f32.vlgmr.msra.gmra.mxu0 %vm1953_vm2, %v2666_v5 }
 0x322   :  { %v4353_v9 = vpop.eup %4352  ;;  %4251 = vmatpush3.msra.mxu0 %v1594_v6  ;;  %4252 = vmatprep.mubr.msk.f32.mxu0 %vm4527_vm0, %v4526_v0 }
 0x323   :  { %v4355_v10 = vpop.eup %4354  ;;  %4260 = vmatprep.subr.mxu0 %v4526_v0  ;;  %v2667_v11 = vmul.f32 %v4353_v9, %v4337_v45 }
 0x324   :  { %v2668_v13 = vmul.f32 %v4355_v10, %v4339_v46 }
 0x325   :  { %4248 = vmatmul.mubr.msk.f32.vlgmr.msra.gmra.mxu1 %vm1953_vm2, %v2667_v11 }
 0x326   :  { %v4357_v20 = vpop.eup %4356  ;;  %4253 = vmatmul.mubr.msk.f32.vlgmr.msra.gmra.mxu0 %vm1953_vm2, %v2668_v13  ;;  %4256 = vmatpush3.msra.mxu1 %v1667_v12 }
 0x327   :  { %v4359_v14 = vpop.eup %4358  ;;  %4261 = vmatpush3.msra.mxu0 %v4786_v25  ;;  %4257 = vmatprep.mubr.msk.f32.mxu1 %vm4527_vm0, %v4526_v0  ;;  %v2669_v15 = vmul.f32 %v4357_v20, %v4341_v49 }
 0x328   :  { %4262 = vmatprep.mubr.msk.f32.mxu0 %vm4527_vm0, %v4526_v0  ;;  %4265 = vmatprep.subr.mxu1 %v4526_v0  ;;  %v2670_v21 = vmul.f32 %v4359_v14, %v4343_v50 }
 0x329   :  { %4270 = vmatprep.subr.mxu0 %v4526_v0  ;;  %4258 = vmatmul.mubr.msk.f32.vlgmr.msra.gmra.mxu1 %vm1953_vm2, %v2669_v15 }
 0x32a   :  { %v4361_v17 = vpop.eup %4360  ;;  %4263 = vmatmul.mubr.msk.f32.vlgmr.msra.gmra.mxu0 %vm1953_vm2, %v2670_v21  ;;  %4266 = vmatpush3.msra.mxu1 %v4788_v28 }
 0x32b   :  { %v4363_v25 = vpop.eup %4362  ;;  %4271 = vmatpush3.msra.mxu0 %v1880_v16  ;;  %4267 = vmatprep.mubr.msk.f32.mxu1 %vm4527_vm0, %v4526_v0  ;;  %v2671_v18 = vmul.f32 %v4361_v17, %v4345_v53 }
 0x32c   :  { %4272 = vmatprep.mubr.msk.f32.mxu0 %vm4527_vm0, %v4526_v0  ;;  %4275 = vmatprep.subr.mxu1 %v4526_v0  ;;  %v2672_v30 = vmul.f32 %v4363_v25, %v4347_v54 }
 0x32d   :  { %4268 = vmatmul.mubr.msk.f32.vlgmr.msra.gmra.mxu1 %vm1953_vm2, %v2671_v18  ;;  %4280 = vmatprep.subr.mxu0 %v4526_v0 }
 0x32e   :  { %v4365_v22 = vpop.eup %4364  ;;  %4273 = vmatmul.mubr.msk.f32.vlgmr.msra.gmra.mxu0 %vm1953_vm2, %v2672_v30  ;;  %4276 = vmatpush3.msra.mxu1 %v1950_v19 }
 0x32f   :  { %4277 = vmatprep.mubr.msk.f32.mxu1 %vm4527_vm0, %v4526_v0  ;;  %v2673_v28 = vmul.f32 %v4365_v22, %v4823_v57  ;;  %4282 = vmatprep.mubr.msk.f32.mxu0 %vm4527_vm0, %v4526_v0 }
 0x330   :  { %4285 = vmatprep.subr.mxu1 %v4526_v0  ;;  %4281 = vmatpush3.msra.mxu0 %v3258_v31 }
 0x331   :  { %4278 = vmatmul.mubr.msk.f32.vlgmr.msra.gmra.mxu1 %vm1953_vm2, %v2673_v28  ;;  %4290 = vmatprep.subr.mxu0 %v4526_v0 }
 0x332   :  { %4287 = vmatprep.mubr.msk.f32.mxu1 %vm4527_vm0, %v4526_v0  ;;  %4286 = vmatpush3.msra.mxu1 %v3259_v23 }
 0x333   :  { %4295 = vmatprep.subr.mxu1 %v4526_v0 }
 0x3e1   :  { %v2743_v26 = vpop.f32.mrf.mxu0 }
 0x3e2   :  { %4283 = vmatmul.mubr.msk.f32.vlgmr.msra.gmra.mxu0 %vm1953_vm2, %v2743_v26 }
 0x3e3   :  { %v4244_v27 = vpop.f32.mrf.mxu0  ;;  %4291 = vmatpush3.msra.mxu0 %v3260_v24  ;;  %4292 = vmatprep.mubr.msk.f32.mxu0 %vm4527_vm0, %v4526_v0 }
 0x3e4   :  { %4300 = vmatprep.subr.mxu0 %v4526_v0 }
 0x3e5   :  { %v2816_v32 = vpop.f32.mrf.mxu1 }
 0x3e6   :  { %v2889_v33 = vpop.f32.mrf.mxu0  ;;  %4288 = vmatmul.mubr.msk.f32.vlgmr.msra.gmra.mxu1 %vm1953_vm2, %v2816_v32 }
 0x3e7   :  { %4293 = vmatmul.mubr.msk.f32.vlgmr.msra.gmra.mxu0 %vm1953_vm2, %v2889_v33  ;;  %v4249_v34 = vpop.f32.mrf.mxu1  ;;  %4296 = vmatpush3.msra.mxu1 %v3261_v29 }
 0x3e8   :  { %v4254_v35 = vpop.f32.mrf.mxu0  ;;  %4297 = vmatprep.mubr.msk.f32.mxu1 %vm4527_vm0, %v4526_v0  ;;  %4301 = vmatpush3.msra.mxu0 %v3258_v31 }
 0x3e9   :  { %v2962_v36 = vpop.f32.mrf.mxu1  ;;  %4302 = vmatprep.mubr.msk.f32.mxu0 %vm4527_vm0, %v4526_v0  ;;  %4305 = vmatprep.subr.mxu1 %v4526_v0 }
 0x3ea   :  { %v3035_v37 = vpop.f32.mrf.mxu0  ;;  %4298 = vmatmul.mubr.msk.f32.vlgmr.msra.gmra.mxu1 %vm1953_vm2, %v2962_v36  ;;  %4310 = vmatprep.subr.mxu0 %v4526_v0 }
 0x3eb   :  { %4303 = vmatmul.mubr.msk.f32.vlgmr.msra.gmra.mxu0 %vm1953_vm2, %v3035_v37  ;;  %v4259_v38 = vpop.f32.mrf.mxu1  ;;  %4306 = vmatpush3.msra.mxu1 %v3259_v23 }
 0x3ec   :  { %v4264_v39 = vpop.f32.mrf.mxu0  ;;  %4307 = vmatprep.mubr.msk.f32.mxu1 %vm4527_vm0, %v4526_v0  ;;  %4311 = vmatpush3.msra.mxu0 %v3260_v24 }
 0x3ed   :  { %v3108_v40 = vpop.f32.mrf.mxu1  ;;  %4312 = vmatprep.mubr.msk.f32.mxu0 %vm4527_vm0, %v4526_v0  ;;  %4315 = vmatprep.subr.mxu1 %v4526_v0 }
 0x3ee   :  { %v3181_v41 = vpop.f32.mrf.mxu0  ;;  %4308 = vmatmul.mubr.msk.f32.vlgmr.msra.gmra.mxu1 %vm1953_vm2, %v3108_v40 }
 0x3ef   :  { %4313 = vmatmul.mubr.msk.f32.vlgmr.msra.gmra.mxu0 %vm1953_vm2, %v3181_v41  ;;  %v4269_v42 = vpop.f32.mrf.mxu1  ;;  %4316 = vmatpush3.msra.mxu1 %v3261_v29 }
 0x3f0   :  { %v4274_v43 = vpop.f32.mrf.mxu0  ;;  %4317 = vmatprep.mubr.msk.f32.mxu1 %vm4527_vm0, %v4526_v0 }
 0x3f1   :  { %v3254_v44 = vpop.f32.mrf.mxu1 }
 0x3f2   :  { %4318 = vmatmul.mubr.msk.f32.vlgmr.msra.gmra.mxu1 %vm1953_vm2, %v3254_v44 }
 0x3f3   :  { %v4279_v45 = vpop.f32.mrf.mxu1 }
 0x4a2   :  { %v3331_v46 = vpop.f32.mrf.mxu0 }
 0x4a3   :  { %v3846_v49 = vsel %vm146_vm1, %v3331_v46, 0.0 }
 0x4a4   :  { %v4284_v47 = vpop.f32.mrf.mxu0 }
 0x4a6   :  { %v3404_v48 = vpop.f32.mrf.mxu1 }
 0x4a7   :  { %v3847_v50 = vsel %vm146_vm1, %v3404_v48, 0.0  ;;  %v3477_v51 = vpop.f32.mrf.mxu0 }
 0x4a8   :  { %v3848_v52 = vadd.f32 %v3847_v50, %v3846_v49  ;;  %v4289_v53 = vpop.f32.mrf.mxu1  ;;  %v3849_v54 = vsel %vm146_vm1, %v3477_v51, 0.0 }
 0x4a9   :  { %v4294_v55 = vpop.f32.mrf.mxu0 }
 0x4aa   :  { %v3850_v56 = vadd.f32 %v3849_v54, %v3848_v52  ;;  %v3550_v57 = vpop.f32.mrf.mxu1 }
 0x4ab   :  { %v3851_v0 = vsel %vm146_vm1, %v3550_v57, 0.0  ;;  %v3623_v59 = vpop.f32.mrf.mxu0 }
 0x4ac   :  { %v3852_v60 = vadd.f32 %v3851_v0, %v3850_v56  ;;  %v4299_v61 = vpop.f32.mrf.mxu1  ;;  %v3853_v2 = vsel %vm146_vm1, %v3623_v59, 0.0 }
 0x4ad   :  { %v4304_v62 = vpop.f32.mrf.mxu0 }
 0x4ae   :  { %v3867_v63 = vadd.f32 %v3983_v58, %v3852_v60  ;;  %v3696_v1 = vpop.f32.mrf.mxu1 }
 0x4af   :  { %v3854_v3 = vsel %vm146_vm1, %v3696_v1, 0.0  ;;  %v3769_v4 = vpop.f32.mrf.mxu0 }
 0x4b0   :  { %3869 = vst.msk [vmem:[#allocation13] sm:$0xff] %vm146_vm1, %v3867_v63  ;;  %v3855_v5 = vadd.f32 %v3854_v3, %v3853_v2  ;;  %v4309_v6 = vpop.f32.mrf.mxu1  ;;  %v3856_v7 = vsel %vm146_vm1, %v3769_v4, 0.0 }
 0x4b1   :  { %v4314_v8 = vpop.f32.mrf.mxu0 }
 0x4b2   :  { %v3857_v9 = vadd.f32 %v3856_v7, %v3855_v5  ;;  %v3842_v10 = vpop.f32.mrf.mxu1 }
 0x4b3   :  { %v3858_v11 = vsel %vm146_vm1, %v3842_v10, 0.0 }
 0x4b4   :  { %v3859_v12 = vadd.f32 %v3858_v11, %v3857_v9  ;;  %v4319_v13 = vpop.f32.mrf.mxu1 }
 0x4b6   :  { %v3868_v20 = vadd.f32 %v3983_v58, %v3859_v12 }
 0x4b8   :  { %3870 = vst.msk [vmem:[#allocation13 + $0x8] sm:$0xff] %vm146_vm1, %v3868_v20 }
 0x4b9   :  { %4497 = shalt.err (!%p4494_p6)
}
 0x4ba   :  { %3882 = dma.vmem_to_hbm [thread:$0]  %s3877_s18, 256, %s4917_s8, [#allocation4], %s4518_s10, %s4518_s10, %s4519_s11  }
 0x4bb   :  { %4514 = dma.done.wait [#allocation4], 256  }
 0x4bc   :  { %4515 = vsyncadd [#allocation4], 4294967040 }
 0x4bd   :  { %3886 = vsyncpa [#allocation3], 1 }
 0x4be   :  { %3887 = vsyncpa [#allocation6], 1 }
 0x4bf   :  { %3888 = vsyncpa [#allocation9], 1 }
 0x4c0   :  { %3889 = vsyncpa [#allocation12], 1 }
 0x4c1   :  { %3890 = vsyncpa [#allocation4], 1 }

</bundles_post_ra>
